<compile_context>
chip_gen: v6e
topology: v6e:2x2x1
jax: 0.10.0
libtpu: 0.0.40
codegen_flags: <defaults>
</compile_context>

<pallas_src>
import functools

import jax
import jax.numpy as jnp
from jax import lax
from jax.experimental import pallas as pl
from jax.experimental.pallas import tpu as pltpu


def _upsample_kernel(x_ref, g_ref, o_ref, *, chunk_rows):
    # x_ref: (BR, K)     K = F*W input pixels per kernel row
    # g_ref: (K, 4*K)    0/1 duplication matrix (resident across the grid)
    # o_ref: (BR, 4*K)   upsampled pixels, already in NCHW row-major order
    br = o_ref.shape[0]
    n_chunks = br // chunk_rows

    def body(i, carry):
        r0 = pl.multiple_of(i * chunk_rows, chunk_rows)
        rows = x_ref[pl.ds(r0, chunk_rows), :]
        out = jnp.dot(rows, g_ref[...], preferred_element_type=jnp.float32)
        o_ref[pl.ds(r0, chunk_rows), :] = out.astype(o_ref.dtype)
        return carry

    lax.fori_loop(0, n_chunks, body, 0, unroll=True)


def _pick_block_rows(nrows, k, m, itemsize):
    """Rows per grid step: big blocks, bounded double-buffered VMEM footprint."""
    pad = lambda n: -(-n // 128) * 128
    per_row = 2 * (pad(k) + pad(m)) * itemsize          # double-buffered in + out
    budget = 8 * 1024 * 1024
    br = min(nrows, 1024, max(8, budget // per_row))
    if br >= nrows:
        # Whole problem fits in one block: still split in two when cheap so the
        # grid has >= 2 steps (keeps both v7x TensorCores busy).
        if nrows >= 16 and nrows % 16 == 0:
            return nrows // 2
        return nrows
    if br >= 64:
        return (br // 64) * 64
    return max(8, (br // 8) * 8)


def _pick_chunk_rows(br):
    """Inner chunk size (divides br) so each matmul result stays in vregs."""
    if br <= 64:
        return br
    for rc in range(64, 7, -8):
        if br % rc == 0:
            return rc
    return br


def yolo_upsample(x):
    """Nearest-neighbor 2x spatial upsample, NCHW in / NCHW out."""
    N, C, H, W = x.shape
    nch = N * C * H

    # Fold F consecutive image rows per kernel row so lanes are ~128 (in) and
    # ~512 (out). Fall back gracefully if nch has no suitable divisor.
    fold = 1
    if W < 128:
        for f in range(max(1, 128 // W), 0, -1):
            if nch % f == 0:
                fold = f
                break

    K = fold * W          # contraction width
    M = 4 * K             # output lanes per kernel row
    nrows = nch // fold

    itemsize = jnp.dtype(x.dtype).itemsize
    br = _pick_block_rows(nrows, K, M, itemsize)
    rc = _pick_chunk_rows(br)
    grid = (pl.cdiv(nrows, br),)

    # Free row-major view (no data movement).
    x2 = x.reshape(nrows, K)

    # 0/1 duplication matrix in x.dtype: out_row[j] = x_row[src[j]]; exact for
    # floating point since each column has exactly one nonzero (== 1).
    # TODO(synk): integer/bool inputs would need a copy/gather formulation
    # instead of the MXU path (v7x has no integer MXU mode).
    j = jnp.arange(M)
    src = (j // (4 * W)) * W + (j % (2 * W)) // 2
    g = (jnp.arange(K)[:, None] == src[None, :]).astype(x.dtype)

    out2 = pl.pallas_call(
        functools.partial(_upsample_kernel, chunk_rows=rc),
        out_shape=jax.ShapeDtypeStruct((nrows, M), x.dtype),
        grid=grid,
        in_specs=[
            pl.BlockSpec((br, K), lambda i: (i, 0)),   # x rows (contiguous in HBM)
            pl.BlockSpec((K, M), lambda i: (0, 0)),    # g, resident across the grid
        ],
        out_specs=pl.BlockSpec((br, M), lambda i: (i, 0)),  # lane-dense output block
        compiler_params=pltpu.CompilerParams(
            dimension_semantics=("parallel",),
            vmem_limit_bytes=32 * 1024 * 1024,
        ),
    )(x2, g)

    # Free reshape back to NCHW: the (nrows, 4*K) rows are already in the
    # row-major order of (N, C, 2H, 2W).
    return out2.reshape(N, C, 2 * H, 2 * W)


if __name__ == "__main__":
    key = jax.random.PRNGKey(0)
    N, C, H, W = 2, 4, 16, 16
    x = jax.random.normal(key, (N, C, H, W), dtype=jnp.float32)

    out = jax.block_until_ready(yolo_upsample(x))

    # Reference: plain-JAX nearest upsample (matches torch nn.Upsample nearest, x2).
    ref = jnp.repeat(jnp.repeat(x, 2, axis=2), 2, axis=3)

    assert out.shape == (N, C, 2 * H, 2 * W), out.shape
    assert out.dtype == x.dtype, out.dtype
    assert bool(jnp.allclose(out, ref, atol=0.0, rtol=0.0)), "mismatch vs reference"

    print("KERNEL_OK")
</pallas_src>

<mosaic_0001>
module attributes {stable_mosaic.version = 11 : i64} {
  func.func @_upsample_kernel(%arg0: i32, %arg1: memref<8x128xf32, #tpu.memory_space<vmem>>, %arg2: memref<128x512xf32, #tpu.memory_space<vmem>>, %arg3: memref<8x512xf32, #tpu.memory_space<vmem>>) attributes {dimension_semantics = [#tpu.dimension_semantics<parallel>], iteration_bounds = array<i64: 2>, scalar_prefetch = 0 : i64, scratch_operands = 0 : i64, tpu.core_type = #tpu.core_type<tc>, window_params = [{transform_indices = @transform_0, window_bounds = array<i64: 8, 128>}, {pipeline_mode = #tpu.pipeline_mode<synchronous>, transform_indices = @transform_1, window_bounds = array<i64: 128, 512>}, {transform_indices = @transform_2, window_bounds = array<i64: 8, 512>}]} {
    %c0_i32 = arith.constant 0 : i32
    %c8_i32 = arith.constant 8 : i32
    %0 = arith.muli %c0_i32, %c8_i32 : i32
    %1 = tpu.assume_multiple %0, 8 : i32
    %2 = arith.index_cast %1 : i32 to index
    %c0 = arith.constant 0 : index
    %3 = vector.load %arg1[%2, %c0] : memref<8x128xf32, #tpu.memory_space<vmem>>, vector<8x128xf32>
    %c0_0 = arith.constant 0 : index
    %c0_1 = arith.constant 0 : index
    %4 = vector.load %arg2[%c0_0, %c0_1] : memref<128x512xf32, #tpu.memory_space<vmem>>, vector<128x512xf32>
    %cst = arith.constant dense<0.000000e+00> : vector<8x512xf32>
    %5 = tpu.matmul %3, %4, %cst {dimension_numbers = #tpu.dot_dimension_numbers<[1], [0], [0], [1], [0, 0, 1, 1], [], []>} : vector<8x128xf32>, vector<128x512xf32>, vector<8x512xf32> -> vector<8x512xf32>
    %6 = arith.index_cast %1 : i32 to index
    %c0_2 = arith.constant 0 : index
    %7 = vector.load %arg3[%6, %c0_2] : memref<8x512xf32, #tpu.memory_space<vmem>>, vector<8x512xf32>
    tpu.vector_store %arg3[%6, %c0_2], %5 {strides = array<i32>} : memref<8x512xf32, #tpu.memory_space<vmem>>, vector<8x512xf32>,
    %c1_i32 = arith.constant 1 : i32
    return
  }
  func.func @transform_0(%arg0: i32) -> (i32, i32) {
    %c0_i32 = arith.constant 0 : i32
    %c0_i32_0 = arith.constant 0 : i32
    return %arg0, %c0_i32 : i32, i32
  }
  func.func @transform_1(%arg0: i32) -> (i32, i32) {
    %c0_i32 = arith.constant 0 : i32
    %c0_i32_0 = arith.constant 0 : i32
    %c0_i32_1 = arith.constant 0 : i32
    return %c0_i32, %c0_i32_0 : i32, i32
  }
  func.func @transform_2(%arg0: i32) -> (i32, i32) {
    %c0_i32 = arith.constant 0 : i32
    %c0_i32_0 = arith.constant 0 : i32
    return %arg0, %c0_i32 : i32, i32
  }
}

</mosaic_0001>

<bundles_post_ra>
// kernel: tpu_custom_call.1
= control target key start
LH: loop header
LB: loop body
LE: loop exit
PB: predicated region body
PF: predicated region fallthrough
CT: control target
= control target key end

     0   :  { %7 = vsyncpa [#allocation3], 0  ;;  %s874_s0 = inlined_call_operand.hbm [shape: f32[16,128], index: 0, kind: input, shape index: {}]   ;;  %s875_s1 = inlined_call_operand.hbm [shape: f32[128,512], index: 1, kind: input, shape index: {}]   ;;  %s876_s2 = inlined_call_operand.hbm [shape: f32[16,512], index: 2, kind: output, shape index: {}]  }
   0x1   :  { %9 = vsyncpa [#allocation3 + $0x1], 0 }
   0x2   :  { %10 = vsyncpa [#allocation6], 0 }
   0x3   :  { %11 = vsyncpa [#allocation4], 0 }
   0x4   :  { %13 = vsyncpa [#allocation4 + $0x1], 0  ;;  %s704_s9 = smov 0   ;;  %s706_s10 = smov 0  }
   0x5   :  { %s708_s11 = smov 0   ;;  %s710_s12 = smov 0  }
   0x6 LB: > { %s725_s13 = sadd.s32 4294967295, %s681_s12   ;;  %s483_s14 = sadd.s32 4294967294, %s681_s12   ;;  %s681_s12 = sphi %s710_s12, %s898_s12   ;;  %s677_s11 = sphi %s708_s11, %s897_s11   ;;  %s673_s10 = sphi %s706_s10, %s896_s10   ;;  %s669_s9 = sphi %s704_s9, %s895_s9  }
   0x7   : > { %p39_p0 = scmp.ne.s32.totalorder %s673_s10, %s669_s9  ;;  %p877_p1 = scmp.eq.s32.totalorder %s725_s13, 0 }
   0x8   : > { %p90_p3 = scmp.eq.s32.totalorder %s483_s14, 1  ;;  %p484_p5 = scmp.ge.s32.totalorder %s681_s12, 1 }
   0x9   : > { %p734_p4 = por %p877_p1, %p39_p0  ;;  %p97_p7 = scmp.lt.s32.totalorder %s681_s12, 3 }
   0xa   : > { %p739_p6 = por %p90_p3, %p39_p0  ;;  %s683_s18 = smov [#allocation5]  }
   0xb   : > { %s881_s15 = scalar_select %p734_p4, 1, 0 }
   0xc   : > { %s882_s16 = scalar_select %p739_p6, 1, 0 }
   0xd   : > { %p744_p8 = pnand %p484_p5, %p97_p7  ;;  %s109_s19 = sshll.u32 %s683_s18, 4  ;;  %s110_s19 = int_to_ptr.vmem [resolvable:$true] %s109_s19 }
   0xe   : > { %s758_s21 = sadd.s32 1, %s681_s12   ;;  %s26_s22 = sadd.s32 1, %s677_s11 }
   0xf   : > { %s883_s17 = scalar_select %p744_p8, 1, 0 }
  0x10   : > { %p507_p9 = pneg %p744_p8  ;;  %s23_s23 = ssub.s32 %s681_s12, %s758_s21 }
  0x11   : > { %s570_s24 = scalar_lea.vmem %s110_s19, 8192  ;;  %p578_p5 = scmp.lt.s32.totalorder %s110_s19, %s110_s19 }
  0x12   : > { %p753_p11 = pnand %p507_p9, %p877_p1  ;;  %p571_p13 = scmp.ne.s32.totalorder %s110_s19, %s570_s24 }
  0x13   : > { %p579_p7 = scmp.lt.s32.totalorder %s570_s24, %s570_s24 }
  0x14   : > { %p561_p12 = pneg %p753_p11 }
  0x15   : > { %p580_p10 = por %p579_p7, %p578_p5 }
  0x16   : > { %p573_p0 = pnand %p571_p13, %p561_p12 }
  0x18   : > { %p574_p3 = pneg %p573_p0 }
  0x1a   : > { %p581_p2 = pnand %p580_p10, %p574_p3 }
  0x1c   : > { %584 = shalt.err (!%p581_p2)
}
  0x1d   : > { %s684_s25 = smov 512   ;;  %s685_s26 = smov 32  }
  0x1e   : > { %510 = dma.hbm_to_vmem [thread:$0]  (!%p753_p11), %s875_s1, 8192, %s110_s19, [#allocation6], %s684_s25, %s684_s25, %s685_s26  }
  0x1f   : > { %p24_p9 = scmp.eq.s32.totalorder %s23_s23, 0  ;;  %p33_p12 = scmp.ne.s32.totalorder %s677_s11, %s673_s10 }
  0x20   : > { %p34_p10 = scmp.eq.s32.totalorder %s681_s12, 0  ;;  %p520_p2 = scmp.lt.s32.totalorder %s681_s12, 2 }
  0x21   : > { %s775_s29 = scalar_select %p24_p9, %s677_s11, %s26_s22  }
  0x22   : > { %p35_p13 = por %p34_p10, %p33_p12  ;;  %p885_p0 = scmp.eq.s32.totalorder %s725_s13, 1 }
  0x23   : > { %s123_s3 = sand.u32 1, %s677_s11   ;;  %s488_s4 = sshll.u32 %s681_s12, 7 }
  0x24   : > { %p779_p3 = por %p885_p0, %p33_p12  ;;  %s487_s5 = sshll.u32 %s123_s3, 3 }
  0x25   : > { %s788_s8 = scalar_lea.hbm %s874_s0, %s488_s4  ;;  %s127_s14 = scalar_lea.vmem [#allocation2], %s487_s5 }
  0x26   : > { %s886_s30 = scalar_select %p779_p3, 1, 0 }
  0x27   : > { %s134_s18 = sshll.u32 %s127_s14, 4  ;;  %p790_p11 = pnand %p520_p2, %p35_p13  ;;  %s135_s18 = int_to_ptr.vmem [resolvable:$true] %s134_s18 }
  0x28   : > { %s124_s20 = scalar_lea.sflag [#allocation3], %s123_s3  ;;  %s585_s22 = scalar_lea.hbm %s788_s8, 128 }
  0x29   : > { %p586_p5 = scmp.ne.s32.totalorder %s788_s8, %s585_s22  ;;  %p587_p7 = pneg %p790_p11 }
  0x2a   : > { %s590_s25 = scalar_lea.hbm %s874_s0, 256  ;;  %p591_p10 = scmp.lt.s32.totalorder %s788_s8, %s874_s0 }
  0x2b   : > { %p588_p9 = pnand %p587_p7, %p586_p5  ;;  %p592_p2 = scmp.lt.s32.totalorder %s590_s25, %s585_s22 }
  0x2d   : > { %p589_p12 = pneg %p588_p9  ;;  %p593_p13 = por %p592_p2, %p591_p10 }
  0x2f   : > { %p594_p0 = pnand %p593_p13, %p589_p12 }
  0x31   : > { %597 = shalt.err (!%p594_p0)
}
  0x32   : > { %s598_s28 = scalar_lea.vmem %s135_s18, 128  ;;  %s686_s3 = smov [#allocation2]  }
  0x33   : > { %p599_p1 = scmp.ne.s32.totalorder %s135_s18, %s598_s28  ;;  %s603_s4 = sshll.u32 %s686_s3, 4  ;;  %s604_s4 = int_to_ptr.vmem [resolvable:$false] %s603_s4 }
  0x34   : > { %s605_s5 = scalar_lea.vmem %s604_s4, 256  ;;  %p606_p5 = scmp.lt.s32.totalorder %s135_s18, %s604_s4 }
  0x35   : > { %p601_p6 = pnand %p599_p1, %p587_p7  ;;  %p607_p9 = scmp.lt.s32.totalorder %s605_s5, %s598_s28 }
  0x37   : > { %p602_p3 = pneg %p601_p6  ;;  %p608_p4 = por %p607_p9, %p606_p5 }
  0x39   : > { %p609_p8 = pnand %p608_p4, %p602_p3 }
  0x3b   : > { %612 = shalt.err (!%p609_p8)
}
  0x3c   : > { %514 = dma.hbm_to_vmem [thread:$0]  (!%p790_p11), %s788_s8, 128, %s135_s18, %s124_s20  }
  0x3d   : > { %p888_p12 = scmp.ne.s32.totalorder %s883_s17, 0 }
  0x3e   : > { %s811_s6 = sand.u32 (!%p888_p12), 1, %s673_s10   ;;  %p889_p1 = scmp.ne.s32.totalorder (!%p888_p12), %s881_s15, 0 }
  0x3f   : > { %143 = sbr.rel (%p888_p12) target bundleno = 314 (0x13a), region = 28  ;;  %s490_s7 = sshll.u32 (!%p888_p12), %s811_s6, 3 }
  0x40   : > { %s146_s14 = scalar_lea.sflag (!%p888_p12), [#allocation3], %s811_s6  ;;  %s815_s22 = scalar_lea.vmem (!%p888_p12), [#allocation2], %s490_s7 }
  0x44   : > { %656 = dma.done.wait (%p889_p1), %s146_s14, 128  }
  0x45   : > { %658 = vsyncadd (%p889_p1), %s146_s14, 4294967168  ;;  %p890_p4 = scmp.eq.s32.totalorder %s725_s13, 0 }
  0x47   : > { %660 = dma.done.wait (%p890_p4), [#allocation6], 8192   ;;  %p891_p6 = pmov %p890_p4 }
  0x48   : > { %v687_v0 = vmov 0.0   ;;  %v236_v1 = vld [vmem:[#allocation5 + $0x1e8] sm:$0xff]  ;;  %v238_v2 = vld [vmem:[#allocation5 + $0x1f8] sm:$0xff]  ;;  %v235_v3 = vld [vmem:[#allocation5 + $0x1e0] sm:$0xff]  ;;  %s492_s15 = sshll.u32 %s811_s6, 5  ;;  %s498_s18 = sshll.u32 %s725_s13, 9 }
  0x49   : > { %662 = vsyncadd (%p891_p6), [#allocation6], 4294959104  ;;  %303 = vmatprep.mubr.f32.mxu0 %v687_v0  ;;  %374 = vmatprep.mubr.f32.mxu1 %v687_v0  ;;  %v237_v4 = vld [vmem:[#allocation5 + $0x1f0] sm:$0xff]  ;;  %v232_v5 = vld [vmem:[#allocation5 + $0x1c8] sm:$0xff]  ;;  %s173_s17 = scalar_lea.vmem [#allocation7], %s492_s15  ;;  %s833_s23 = scalar_lea.hbm %s876_s2, %s498_s18 }
  0x4a   : > { %239 = vmatprep.subr.mxu0 %v236_v1  ;;  %310 = vmatprep.subr.mxu1 %v238_v2  ;;  %v234_v6 = vld [vmem:[#allocation5 + $0x1d8] sm:$0xff]  ;;  %v231_v7 = vld [vmem:[#allocation5 + $0x1c0] sm:$0xff]  ;;  %v233_v8 = vld [vmem:[#allocation5 + $0x1d0] sm:$0xff]  ;;  %s403_s8 = sshll.u32 %s173_s17, 4  ;;  %s389_s24 = scalar_lea.sflag [#allocation4], %s811_s6  ;;  %s828_s8 = int_to_ptr.vmem [resolvable:$true] %s403_s8 }
  0x4b   : > { %240 = vmatpush1.msra.mxu0 %v235_v3  ;;  %311 = vmatpush1.msra.mxu1 %v237_v4  ;;  %v228_v9 = vld [vmem:[#allocation5 + $0x1a8] sm:$0xff]  ;;  %v230_v10 = vld [vmem:[#allocation5 + $0x1b8] sm:$0xff]  ;;  %v227_v11 = vld [vmem:[#allocation5 + $0x1a0] sm:$0xff]  ;;  %s613_s13 = scalar_lea.vmem %s828_s8, 512  ;;  %p892_p3 = scmp.ne.s32.totalorder %s886_s30, 0 }
  0x4c   : > { %241 = vmatprep.subr.mxu0 %v232_v5  ;;  %312 = vmatprep.subr.mxu1 %v234_v6  ;;  %v229_v12 = vld [vmem:[#allocation5 + $0x1b0] sm:$0xff]  ;;  %v224_v13 = vld [vmem:[#allocation5 + $0x188] sm:$0xff]  ;;  %v226_v14 = vld [vmem:[#allocation5 + $0x198] sm:$0xff]  ;;  %p614_p8 = scmp.ne.s32.totalorder %s828_s8, %s613_s13  ;;  %s688_s25 = smov [#allocation7]  }
  0x4d   : > { %242 = vmatpush1.msra.mxu0 %v231_v7  ;;  %313 = vmatpush1.msra.mxu1 %v233_v8  ;;  %v223_v15 = vld [vmem:[#allocation5 + $0x180] sm:$0xff]  ;;  %v225_v16 = vld [vmem:[#allocation5 + $0x190] sm:$0xff]  ;;  %v220_v17 = vld [vmem:[#allocation5 + $0x168] sm:$0xff]  ;;  %s617_s26 = sshll.u32 %s688_s25, 4  ;;  %s618_s26 = int_to_ptr.vmem [resolvable:$false] %s617_s26 }
  0x4e   : > { %243 = vmatprep.subr.mxu0 %v228_v9  ;;  %314 = vmatprep.subr.mxu1 %v230_v10  ;;  %v222_v18 = vld [vmem:[#allocation5 + $0x178] sm:$0xff]  ;;  %v219_v19 = vld [vmem:[#allocation5 + $0x160] sm:$0xff]  ;;  %v221_v20 = vld [vmem:[#allocation5 + $0x170] sm:$0xff]  ;;  %p615_p11 = pnand %p614_p8, %p892_p3  ;;  %s619_s27 = scalar_lea.vmem %s618_s26, 1024 }
  0x4f   : > { %244 = vmatpush1.msra.mxu0 %v227_v11  ;;  %315 = vmatpush1.msra.mxu1 %v229_v12  ;;  %v216_v21 = vld [vmem:[#allocation5 + $0x148] sm:$0xff]  ;;  %v218_v22 = vld [vmem:[#allocation5 + $0x158] sm:$0xff]  ;;  %v215_v23 = vld [vmem:[#allocation5 + $0x140] sm:$0xff]  ;;  %p620_p10 = scmp.lt.s32.totalorder %s828_s8, %s618_s26  ;;  %p621_p2 = scmp.lt.s32.totalorder %s619_s27, %s613_s13 }
  0x50   : > { %245 = vmatprep.subr.mxu0 %v224_v13  ;;  %316 = vmatprep.subr.mxu1 %v226_v14  ;;  %v217_v24 = vld [vmem:[#allocation5 + $0x150] sm:$0xff]  ;;  %v212_v25 = vld [vmem:[#allocation5 + $0x128] sm:$0xff]  ;;  %v214_v26 = vld [vmem:[#allocation5 + $0x138] sm:$0xff]  ;;  %p616_p7 = pneg %p615_p11 }
  0x51   : > { %246 = vmatpush1.msra.mxu0 %v223_v15  ;;  %317 = vmatpush1.msra.mxu1 %v225_v16  ;;  %v211_v27 = vld [vmem:[#allocation5 + $0x120] sm:$0xff]  ;;  %v213_v28 = vld [vmem:[#allocation5 + $0x130] sm:$0xff]  ;;  %v208_v29 = vld [vmem:[#allocation5 + $0x108] sm:$0xff]  ;;  %p622_p13 = por %p621_p2, %p620_p10 }
  0x52   : > { %247 = vmatprep.subr.mxu0 %v220_v17  ;;  %318 = vmatprep.subr.mxu1 %v222_v18  ;;  %v210_v30 = vld [vmem:[#allocation5 + $0x118] sm:$0xff]  ;;  %v207_v31 = vld [vmem:[#allocation5 + $0x100] sm:$0xff]  ;;  %v209_v32 = vld [vmem:[#allocation5 + $0x110] sm:$0xff] }
  0x53   : > { %248 = vmatpush1.msra.mxu0 %v219_v19  ;;  %319 = vmatpush1.msra.mxu1 %v221_v20  ;;  %v204_v33 = vld [vmem:[#allocation5 + $0xe8] sm:$0xff]  ;;  %v206_v34 = vld [vmem:[#allocation5 + $0xf8] sm:$0xff]  ;;  %v203_v35 = vld [vmem:[#allocation5 + $0xe0] sm:$0xff]  ;;  %p623_p0 = pnand %p622_p13, %p616_p7 }
  0x54   : > { %249 = vmatprep.subr.mxu0 %v216_v21  ;;  %320 = vmatprep.subr.mxu1 %v218_v22  ;;  %v205_v36 = vld [vmem:[#allocation5 + $0xf0] sm:$0xff]  ;;  %v200_v37 = vld [vmem:[#allocation5 + $0xc8] sm:$0xff]  ;;  %v202_v38 = vld [vmem:[#allocation5 + $0xd8] sm:$0xff] }
  0x55   : > { %250 = vmatpush1.msra.mxu0 %v215_v23  ;;  %321 = vmatpush1.msra.mxu1 %v217_v24  ;;  %v199_v39 = vld [vmem:[#allocation5 + $0xc0] sm:$0xff]  ;;  %v201_v40 = vld [vmem:[#allocation5 + $0xd0] sm:$0xff]  ;;  %v196_v41 = vld [vmem:[#allocation5 + $0xa8] sm:$0xff] }
  0x56   : > { %251 = vmatprep.subr.mxu0 %v212_v25  ;;  %322 = vmatprep.subr.mxu1 %v214_v26  ;;  %v198_v42 = vld [vmem:[#allocation5 + $0xb8] sm:$0xff]  ;;  %v195_v43 = vld [vmem:[#allocation5 + $0xa0] sm:$0xff]  ;;  %v197_v44 = vld [vmem:[#allocation5 + $0xb0] sm:$0xff] }
  0x57   : > { %252 = vmatpush1.msra.mxu0 %v211_v27  ;;  %323 = vmatpush1.msra.mxu1 %v213_v28  ;;  %v192_v45 = vld [vmem:[#allocation5 + $0x88] sm:$0xff]  ;;  %v194_v46 = vld [vmem:[#allocation5 + $0x98] sm:$0xff]  ;;  %v191_v47 = vld [vmem:[#allocation5 + $0x80] sm:$0xff] }
  0x58   : > { %253 = vmatprep.subr.mxu0 %v208_v29  ;;  %324 = vmatprep.subr.mxu1 %v210_v30  ;;  %v193_v48 = vld [vmem:[#allocation5 + $0x90] sm:$0xff]  ;;  %v188_v49 = vld [vmem:[#allocation5 + $0x68] sm:$0xff]  ;;  %v190_v50 = vld [vmem:[#allocation5 + $0x78] sm:$0xff] }
  0x59   : > { %254 = vmatpush1.msra.mxu0 %v207_v31  ;;  %325 = vmatpush1.msra.mxu1 %v209_v32  ;;  %v187_v51 = vld [vmem:[#allocation5 + $0x60] sm:$0xff]  ;;  %v189_v52 = vld [vmem:[#allocation5 + $0x70] sm:$0xff]  ;;  %v184_v53 = vld [vmem:[#allocation5 + $0x48] sm:$0xff] }
  0x5a   : > { %255 = vmatprep.subr.mxu0 %v204_v33  ;;  %326 = vmatprep.subr.mxu1 %v206_v34  ;;  %v186_v54 = vld [vmem:[#allocation5 + $0x58] sm:$0xff]  ;;  %v183_v55 = vld [vmem:[#allocation5 + $0x40] sm:$0xff]  ;;  %v185_v56 = vld [vmem:[#allocation5 + $0x50] sm:$0xff] }
  0x5b   : > { %256 = vmatpush1.msra.mxu0 %v203_v35  ;;  %327 = vmatpush1.msra.mxu1 %v205_v36  ;;  %v180_v57 = vld [vmem:[#allocation5 + $0x28] sm:$0xff]  ;;  %v182_v58 = vld [vmem:[#allocation5 + $0x38] sm:$0xff]  ;;  %v179_v59 = vld [vmem:[#allocation5 + $0x20] sm:$0xff] }
  0x5c   : > { %257 = vmatprep.subr.mxu0 %v200_v37  ;;  %328 = vmatprep.subr.mxu1 %v202_v38  ;;  %v181_v60 = vld [vmem:[#allocation5 + $0x30] sm:$0xff]  ;;  %v176_v61 = vld [vmem:[#allocation5 + $0x8] sm:$0xff]  ;;  %v178_v62 = vld [vmem:[#allocation5 + $0x18] sm:$0xff] }
  0x5d   : > { %258 = vmatpush1.msra.mxu0 %v199_v39  ;;  %329 = vmatpush1.msra.mxu1 %v201_v40  ;;  %v175_v63 = vld [vmem:[#allocation5] sm:$0xff]  ;;  %v177_v0 = vld [vmem:[#allocation5 + $0x10] sm:$0xff] }
  0x5e   : > { %259 = vmatprep.subr.mxu0 %v196_v41  ;;  %330 = vmatprep.subr.mxu1 %v198_v42  ;;  %v174_v1 = vld [vmem:[%s815_s22] sm:$0xff] }
  0x5f   : > { %260 = vmatpush1.msra.mxu0 %v195_v43  ;;  %331 = vmatpush1.msra.mxu1 %v197_v44 }
  0x60   : > { %261 = vmatprep.subr.mxu0 %v192_v45  ;;  %332 = vmatprep.subr.mxu1 %v194_v46 }
  0x61   : > { %262 = vmatpush1.msra.mxu0 %v191_v47  ;;  %333 = vmatpush1.msra.mxu1 %v193_v48 }
  0x62   : > { %263 = vmatprep.subr.mxu0 %v188_v49  ;;  %334 = vmatprep.subr.mxu1 %v190_v50 }
  0x63   : > { %264 = vmatpush1.msra.mxu0 %v187_v51  ;;  %335 = vmatpush1.msra.mxu1 %v189_v52 }
  0x64   : > { %265 = vmatprep.subr.mxu0 %v184_v53  ;;  %336 = vmatprep.subr.mxu1 %v186_v54 }
  0x65   : > { %266 = vmatpush1.msra.mxu0 %v183_v55  ;;  %337 = vmatpush1.msra.mxu1 %v185_v56 }
  0x66   : > { %267 = vmatprep.subr.mxu0 %v180_v57  ;;  %338 = vmatprep.subr.mxu1 %v182_v58 }
  0x67   : > { %268 = vmatpush1.msra.mxu0 %v179_v59  ;;  %339 = vmatpush1.msra.mxu1 %v181_v60 }
  0x68   : > { %269 = vmatprep.subr.mxu0 %v176_v61  ;;  %340 = vmatprep.subr.mxu1 %v178_v62 }
  0x69   : > { %270 = vmatpush1.msra.mxu0 %v175_v63  ;;  %341 = vmatpush1.msra.mxu1 %v177_v0 }
  0x6a   : > { %304 = vmatmul.mubr.f32.vlgmr.msra.gmra.mxu0 %v174_v1  ;;  %375 = vmatmul.mubr.f32.vlgmr.msra.gmra.mxu1 %v174_v1 }
 0x12a   : > { %v305_v2 = vpop.f32.mrf.mxu0  ;;  %v376_v3 = vpop.f32.mrf.mxu1 }
 0x12b   : > { %384 = vst [vmem:[%s173_s17] sm:$0xff] %v305_v2  ;;  %386 = vst [vmem:[%s173_s17 + $0x10] sm:$0xff] %v376_v3 }
 0x12c   : > { %v307_v4 = vpop.f32.mrf.mxu0  ;;  %v378_v5 = vpop.f32.mrf.mxu1 }
 0x12d   : > { %385 = vst [vmem:[%s173_s17 + $0x8] sm:$0xff] %v307_v4  ;;  %387 = vst [vmem:[%s173_s17 + $0x18] sm:$0xff] %v378_v5 }
 0x12e   : > { %626 = shalt.err (!%p623_p0)
}
 0x12f   : > { %s627_s28 = scalar_lea.hbm %s833_s23, 512  ;;  %s631_s5 = scalar_lea.hbm %s876_s2, 1024 }
 0x130   : > { %p628_p5 = scmp.ne.s32.totalorder %s833_s23, %s627_s28  ;;  %p632_p1 = scmp.lt.s32.totalorder %s833_s23, %s876_s2 }
 0x131   : > { %p633_p4 = scmp.lt.s32.totalorder %s631_s5, %s627_s28 }
 0x132   : > { %p629_p9 = pnand %p628_p5, %p892_p3 }
 0x133   : > { %p634_p6 = por %p633_p4, %p632_p1 }
 0x134   : > { %p630_p12 = pneg %p629_p9 }
 0x136   : > { %p635_p8 = pnand %p634_p6, %p630_p12 }
 0x138   : > { %638 = shalt.err (!%p635_p8)
}
 0x139   : > { %505 = dma.vmem_to_hbm [thread:$0]  (%p892_p3), %s828_s8, 512, %s833_s23, %s389_s24  }
 0x13a PF: > { %s415_s14 = sand.u32 1, %s669_s9   ;;  %p893_p11 = scmp.ne.s32.totalorder %s882_s16, 0 }
 0x13b   : > { %p894_p7 = scmp.ge.s32.totalorder %s681_s12, 2  ;;  %s416_s22 = scalar_lea.sflag [#allocation4], %s415_s14 }
 0x13d   : > { %p516_p10 = pnand %p894_p7, %p893_p11 }
 0x13f   : > { %p517_p2 = pneg %p516_p10 }
 0x141   : > { %664 = dma.done.wait (%p517_p2), %s416_s22, 512  }
 0x142   : > { %666 = vsyncadd (%p517_p2), %s416_s22, 4294966784  ;;  %p16_p13 = scmp.ge.s32.totalorder %s758_s21, 4   ;;  %s895_s9 = smov %s673_s10 }
 0x143   : > { %s896_s10 = smov %s677_s11  ;;  %s897_s11 = smov %s775_s29 }
 0x144   : > { %s898_s12 = smov %s758_s21  ;;  %18 = sbr.rel (!%p16_p13) target bundleno = 6 (0x6), region = 78 }
 0x149   :  { %421 = vsyncpa [#allocation3], 1 }
 0x14a   :  { %423 = vsyncpa [#allocation3 + $0x1], 1 }
 0x14b   :  { %424 = vsyncpa [#allocation6], 1 }
 0x14c   :  { %425 = vsyncpa [#allocation4], 1 }
 0x14d   :  { %427 = vsyncpa [#allocation4 + $0x1], 1 }

</bundles_post_ra>
